<compile_context>
chip_gen: v5e
topology: v5e:2x2
jax: 0.10.0
libtpu: 0.0.40
codegen_flags: <defaults>
</compile_context>

<pallas_src>
import jax
import jax.numpy as jnp
from jax import lax
from jax.experimental import pallas as pl
from jax.experimental.pallas import tpu as pltpu

HIDDEN = 32
INPUT = 1


def rnn_kernel(x_ref, h0_ref, p_ref, y_ref, hT_ref):
    """Elman RNN recurrence + per-step Linear, entirely in VMEM / vregs.

    x_ref : (B, T, 1)    batch-first input
    h0_ref: (B, H)       initial hidden state (aliases hT_ref)
    p_ref : (H + 8, H)   packed params:
                           rows 0:H   -> w_hh^T
                           row  H     -> w_ih[:, 0]
                           row  H+1   -> b_ih + b_hh
                           row  H+2   -> w_out[0, :]
                           row  H+3   -> b_out broadcast
    y_ref : (B, T)       per-step outputs (batch-first)
    hT_ref: (B, H)       final hidden state
    """
    T = y_ref.shape[1]
    H = hT_ref.shape[1]

    # Unpack parameters (static sublane slices of the single packed buffer).
    whh = p_ref[0:H, :]                 # (H, H), pre-transposed
    wih = p_ref[H:H + 1, :]             # (1, H)
    bias = p_ref[H + 1:H + 2, :]        # (1, H)
    wout = p_ref[H + 2:H + 3, :]        # (1, H)
    bout = p_ref[H + 3:H + 4, 0:1]      # (1, 1)

    # Input pre-activation for every time step at once.
    # I == 1, so this is a single broadcast multiply-add on the VPU.
    pre = x_ref[...] * wih + bias       # (B, T, H)

    # Serial recurrence with the hidden state carried in vregs.
    # T is static and small -> fully unroll (LLO scheduling visibility).
    h = h0_ref[...]                     # (B, H)
    ys = []
    for t in range(T):
        h = jnp.tanh(pre[:, t, :]
                     + jnp.dot(h, whh, preferred_element_type=jnp.float32))
        # Output projection per step, in registers; does not feed the
        # recurrence, so it stays off the tanh-serialized critical path.
        ys.append(jnp.sum(h * wout, axis=-1, keepdims=True))   # (B, 1)

    hT_ref[...] = h
    # Assemble the T columns in registers and store y once.
    y_ref[...] = (jnp.concatenate(ys, axis=-1) + bout).astype(y_ref.dtype)


def pack_params(params):
    """One-time parameter re-layout (run OUTSIDE the per-call hot path).

    Returns a single (H + 8, H) float32 buffer:
      rows 0:H   w_hh^T
      row  H     w_ih[:, 0]
      row  H+1   b_ih + b_hh
      row  H+2   w_out[0, :]
      row  H+3   b_out (broadcast across the row)
      rows H+4:  zero padding (sublane alignment)
    """
    H = HIDDEN
    packed = jnp.zeros((H + 8, H), jnp.float32)
    packed = packed.at[:H, :].set(params["w_hh"].T.astype(jnp.float32))
    packed = packed.at[H, :].set(params["w_ih"].reshape(H).astype(jnp.float32))
    packed = packed.at[H + 1, :].set(
        (params["b_ih"] + params["b_hh"]).astype(jnp.float32))
    packed = packed.at[H + 2, :].set(
        params["w_out"].reshape(H).astype(jnp.float32))
    packed = packed.at[H + 3, :].set(
        jnp.full((H,), params["b_out"].reshape(())[()], jnp.float32))
    return packed


def second_rnn_forward(x, h_state, packed_params):
    """Matches secondRNN.forward(x_input, h_state).

    x            : (B, T, 1) float32 (batch_first, like PyTorch)
    h_state      : (1, B, 32) or None
    packed_params: (HIDDEN + 8, HIDDEN) from pack_params()
    returns      : (y (B, T, 1), h_state (1, B, 32))
    """
    B, T, I = x.shape
    assert I == INPUT
    H = HIDDEN

    h0 = (jnp.zeros((B, H), jnp.float32) if h_state is None
          else h_state.reshape(B, H).astype(jnp.float32))

    vmem = pl.BlockSpec(memory_space=pltpu.MemorySpace.VMEM)
    y2d, hT = pl.pallas_call(
        rnn_kernel,
        out_shape=(jax.ShapeDtypeStruct((B, T), jnp.float32),
                   jax.ShapeDtypeStruct((B, H), jnp.float32)),
        in_specs=[vmem, vmem, vmem],
        out_specs=(vmem, vmem),
        input_output_aliases={1: 1},   # h0 buffer reused for hT
    )(x.astype(jnp.float32), h0, packed_params)

    # Metadata-only reshapes back to the PyTorch layout.
    return y2d[..., None], hT.reshape(1, B, H)


def init_params(key):
    """Deterministic init with PyTorch shapes:
       rnn.weight_ih_l0 (32,1), rnn.weight_hh_l0 (32,32),
       rnn.bias_ih_l0 (32,), rnn.bias_hh_l0 (32,),
       out.weight (1,32), out.bias (1,)."""
    ks = jax.random.split(key, 6)
    s = 1.0 / jnp.sqrt(jnp.float32(HIDDEN))
    u = lambda k, shape: jax.random.uniform(k, shape, jnp.float32, -s, s)
    return {
        "w_ih": u(ks[0], (HIDDEN, INPUT)),
        "w_hh": u(ks[1], (HIDDEN, HIDDEN)),
        "b_ih": u(ks[2], (HIDDEN,)),
        "b_hh": u(ks[3], (HIDDEN,)),
        "w_out": u(ks[4], (1, HIDDEN)),
        "b_out": u(ks[5], (1,)),
    }


def reference_forward(x, h_state, params):
    """Pure-JAX reference (lax.scan) for correctness checking."""
    B, T, _ = x.shape
    h0 = (jnp.zeros((B, HIDDEN), jnp.float32) if h_state is None
          else h_state.reshape(B, HIDDEN))

    def step(h, x_t):
        h_new = jnp.tanh(x_t @ params["w_ih"].T + params["b_ih"]
                         + h @ params["w_hh"].T + params["b_hh"])
        y_t = h_new @ params["w_out"].T + params["b_out"]
        return h_new, y_t

    hT, y_tm = lax.scan(step, h0, jnp.transpose(x, (1, 0, 2)))
    return jnp.transpose(y_tm, (1, 0, 2)), hT.reshape(1, B, HIDDEN)


if __name__ == "__main__":
    key = jax.random.PRNGKey(0)
    k_param, k_x = jax.random.split(key)

    params = init_params(k_param)
    # One-time packing, outside the per-call hot path.
    packed = jax.block_until_ready(pack_params(params))

    B, T = 2, 8
    x = jax.random.normal(k_x, (B, T, INPUT), jnp.float32)

    fwd = jax.jit(second_rnn_forward)

    # Call 1: h_state = None (matches the module's usage with the global h_state)
    y, hT = fwd(x, None, packed)
    y = jax.block_until_ready(y)
    hT = jax.block_until_ready(hT)

    y_ref, hT_ref = reference_forward(x, None, params)
    assert y.shape == (B, T, 1) and hT.shape == (1, B, HIDDEN)
    assert jnp.allclose(y, y_ref, rtol=1e-5, atol=1e-5)
    assert jnp.allclose(hT, hT_ref, rtol=1e-5, atol=1e-5)

    # Call 2: feed the hidden state back in (stateful RNN usage).
    y2, hT2 = fwd(x, hT, packed)
    y2 = jax.block_until_ready(y2)
    hT2 = jax.block_until_ready(hT2)
    y2_ref, hT2_ref = reference_forward(x, hT, params)
    assert jnp.allclose(y2, y2_ref, rtol=1e-5, atol=1e-5)
    assert jnp.allclose(hT2, hT2_ref, rtol=1e-5, atol=1e-5)

    print("KERNEL_OK")
</pallas_src>

<mosaic_0001>
module attributes {stable_mosaic.version = 11 : i64} {
  func.func @rnn_kernel(%arg0: memref<2x8x1xf32, #tpu.memory_space<vmem>>, %arg1: memref<2x32xf32, #tpu.memory_space<vmem>>, %arg2: memref<40x32xf32, #tpu.memory_space<vmem>>, %arg3: memref<2x8xf32, #tpu.memory_space<vmem>>, %arg4: memref<2x32xf32, #tpu.memory_space<vmem>>) attributes {dimension_semantics = [], scalar_prefetch = 0 : i64, scratch_operands = 0 : i64, tpu.core_type = #tpu.core_type<tc>} {
    %c0 = arith.constant 0 : index
    %c0_0 = arith.constant 0 : index
    %0 = vector.load %arg2[%c0, %c0_0] : memref<40x32xf32, #tpu.memory_space<vmem>>, vector<32x32xf32>
    %c32 = arith.constant 32 : index
    %c0_1 = arith.constant 0 : index
    %1 = vector.load %arg2[%c32, %c0_1] : memref<40x32xf32, #tpu.memory_space<vmem>>, vector<1x32xf32>
    %c33 = arith.constant 33 : index
    %c0_2 = arith.constant 0 : index
    %2 = vector.load %arg2[%c33, %c0_2] : memref<40x32xf32, #tpu.memory_space<vmem>>, vector<1x32xf32>
    %c34 = arith.constant 34 : index
    %c0_3 = arith.constant 0 : index
    %3 = vector.load %arg2[%c34, %c0_3] : memref<40x32xf32, #tpu.memory_space<vmem>>, vector<1x32xf32>
    %c35 = arith.constant 35 : index
    %c0_4 = arith.constant 0 : index
    %4 = vector.load %arg2[%c35, %c0_4] : memref<40x32xf32, #tpu.memory_space<vmem>>, vector<1x1xf32>
    %c0_5 = arith.constant 0 : index
    %c0_6 = arith.constant 0 : index
    %c0_7 = arith.constant 0 : index
    %5 = vector.load %arg0[%c0_5, %c0_6, %c0_7] : memref<2x8x1xf32, #tpu.memory_space<vmem>>, vector<2x8x1xf32>
    %6 = vector.shape_cast %1 : vector<1x32xf32> to vector<1x1x32xf32>
    %7 = vector.broadcast %5 : vector<2x8x1xf32> to vector<2x8x32xf32>
    %8 = vector.broadcast %6 : vector<1x1x32xf32> to vector<2x8x32xf32>
    %9 = arith.mulf %7, %8 : vector<2x8x32xf32>
    %10 = vector.shape_cast %2 : vector<1x32xf32> to vector<1x1x32xf32>
    %11 = vector.broadcast %10 : vector<1x1x32xf32> to vector<2x8x32xf32>
    %12 = arith.addf %9, %11 : vector<2x8x32xf32>
    %c0_8 = arith.constant 0 : index
    %c0_9 = arith.constant 0 : index
    %13 = vector.load %arg1[%c0_8, %c0_9] : memref<2x32xf32, #tpu.memory_space<vmem>>, vector<2x32xf32>
    %14 = vector.extract_strided_slice %12 {offsets = [0, 0, 0], sizes = [2, 1, 32], strides = [1, 1, 1]} : vector<2x8x32xf32> to vector<2x1x32xf32>
    %15 = vector.shape_cast %14 : vector<2x1x32xf32> to vector<2x32xf32>
    %cst = arith.constant dense<0.000000e+00> : vector<2x32xf32>
    %16 = tpu.matmul %13, %0, %cst {dimension_numbers = #tpu.dot_dimension_numbers<[1], [0], [0], [1], [0, 0, 1, 1], [], []>} : vector<2x32xf32>, vector<32x32xf32>, vector<2x32xf32> -> vector<2x32xf32>
    %17 = arith.addf %15, %16 : vector<2x32xf32>
    %18 = math.tanh %17 : vector<2x32xf32>
    %19 = vector.broadcast %3 : vector<1x32xf32> to vector<2x32xf32>
    %20 = arith.mulf %18, %19 : vector<2x32xf32>
    %cst_10 = arith.constant dense<0.000000e+00> : vector<2xf32>
    %21 = vector.multi_reduction <add>, %20, %cst_10 [1] : vector<2x32xf32> to vector<2xf32>
    %22 = vector.shape_cast %21 : vector<2xf32> to vector<2x1xf32>
    %23 = vector.extract_strided_slice %12 {offsets = [0, 1, 0], sizes = [2, 1, 32], strides = [1, 1, 1]} : vector<2x8x32xf32> to vector<2x1x32xf32>
    %24 = vector.shape_cast %23 : vector<2x1x32xf32> to vector<2x32xf32>
    %cst_11 = arith.constant dense<0.000000e+00> : vector<2x32xf32>
    %25 = tpu.matmul %18, %0, %cst_11 {dimension_numbers = #tpu.dot_dimension_numbers<[1], [0], [0], [1], [0, 0, 1, 1], [], []>} : vector<2x32xf32>, vector<32x32xf32>, vector<2x32xf32> -> vector<2x32xf32>
    %26 = arith.addf %24, %25 : vector<2x32xf32>
    %27 = math.tanh %26 : vector<2x32xf32>
    %28 = vector.broadcast %3 : vector<1x32xf32> to vector<2x32xf32>
    %29 = arith.mulf %27, %28 : vector<2x32xf32>
    %cst_12 = arith.constant dense<0.000000e+00> : vector<2xf32>
    %30 = vector.multi_reduction <add>, %29, %cst_12 [1] : vector<2x32xf32> to vector<2xf32>
    %31 = vector.shape_cast %30 : vector<2xf32> to vector<2x1xf32>
    %32 = vector.extract_strided_slice %12 {offsets = [0, 2, 0], sizes = [2, 1, 32], strides = [1, 1, 1]} : vector<2x8x32xf32> to vector<2x1x32xf32>
    %33 = vector.shape_cast %32 : vector<2x1x32xf32> to vector<2x32xf32>
    %cst_13 = arith.constant dense<0.000000e+00> : vector<2x32xf32>
    %34 = tpu.matmul %27, %0, %cst_13 {dimension_numbers = #tpu.dot_dimension_numbers<[1], [0], [0], [1], [0, 0, 1, 1], [], []>} : vector<2x32xf32>, vector<32x32xf32>, vector<2x32xf32> -> vector<2x32xf32>
    %35 = arith.addf %33, %34 : vector<2x32xf32>
    %36 = math.tanh %35 : vector<2x32xf32>
    %37 = vector.broadcast %3 : vector<1x32xf32> to vector<2x32xf32>
    %38 = arith.mulf %36, %37 : vector<2x32xf32>
    %cst_14 = arith.constant dense<0.000000e+00> : vector<2xf32>
    %39 = vector.multi_reduction <add>, %38, %cst_14 [1] : vector<2x32xf32> to vector<2xf32>
    %40 = vector.shape_cast %39 : vector<2xf32> to vector<2x1xf32>
    %41 = vector.extract_strided_slice %12 {offsets = [0, 3, 0], sizes = [2, 1, 32], strides = [1, 1, 1]} : vector<2x8x32xf32> to vector<2x1x32xf32>
    %42 = vector.shape_cast %41 : vector<2x1x32xf32> to vector<2x32xf32>
    %cst_15 = arith.constant dense<0.000000e+00> : vector<2x32xf32>
    %43 = tpu.matmul %36, %0, %cst_15 {dimension_numbers = #tpu.dot_dimension_numbers<[1], [0], [0], [1], [0, 0, 1, 1], [], []>} : vector<2x32xf32>, vector<32x32xf32>, vector<2x32xf32> -> vector<2x32xf32>
    %44 = arith.addf %42, %43 : vector<2x32xf32>
    %45 = math.tanh %44 : vector<2x32xf32>
    %46 = vector.broadcast %3 : vector<1x32xf32> to vector<2x32xf32>
    %47 = arith.mulf %45, %46 : vector<2x32xf32>
    %cst_16 = arith.constant dense<0.000000e+00> : vector<2xf32>
    %48 = vector.multi_reduction <add>, %47, %cst_16 [1] : vector<2x32xf32> to vector<2xf32>
    %49 = vector.shape_cast %48 : vector<2xf32> to vector<2x1xf32>
    %50 = vector.extract_strided_slice %12 {offsets = [0, 4, 0], sizes = [2, 1, 32], strides = [1, 1, 1]} : vector<2x8x32xf32> to vector<2x1x32xf32>
    %51 = vector.shape_cast %50 : vector<2x1x32xf32> to vector<2x32xf32>
    %cst_17 = arith.constant dense<0.000000e+00> : vector<2x32xf32>
    %52 = tpu.matmul %45, %0, %cst_17 {dimension_numbers = #tpu.dot_dimension_numbers<[1], [0], [0], [1], [0, 0, 1, 1], [], []>} : vector<2x32xf32>, vector<32x32xf32>, vector<2x32xf32> -> vector<2x32xf32>
    %53 = arith.addf %51, %52 : vector<2x32xf32>
    %54 = math.tanh %53 : vector<2x32xf32>
    %55 = vector.broadcast %3 : vector<1x32xf32> to vector<2x32xf32>
    %56 = arith.mulf %54, %55 : vector<2x32xf32>
    %cst_18 = arith.constant dense<0.000000e+00> : vector<2xf32>
    %57 = vector.multi_reduction <add>, %56, %cst_18 [1] : vector<2x32xf32> to vector<2xf32>
    %58 = vector.shape_cast %57 : vector<2xf32> to vector<2x1xf32>
    %59 = vector.extract_strided_slice %12 {offsets = [0, 5, 0], sizes = [2, 1, 32], strides = [1, 1, 1]} : vector<2x8x32xf32> to vector<2x1x32xf32>
    %60 = vector.shape_cast %59 : vector<2x1x32xf32> to vector<2x32xf32>
    %cst_19 = arith.constant dense<0.000000e+00> : vector<2x32xf32>
    %61 = tpu.matmul %54, %0, %cst_19 {dimension_numbers = #tpu.dot_dimension_numbers<[1], [0], [0], [1], [0, 0, 1, 1], [], []>} : vector<2x32xf32>, vector<32x32xf32>, vector<2x32xf32> -> vector<2x32xf32>
    %62 = arith.addf %60, %61 : vector<2x32xf32>
    %63 = math.tanh %62 : vector<2x32xf32>
    %64 = vector.broadcast %3 : vector<1x32xf32> to vector<2x32xf32>
    %65 = arith.mulf %63, %64 : vector<2x32xf32>
    %cst_20 = arith.constant dense<0.000000e+00> : vector<2xf32>
    %66 = vector.multi_reduction <add>, %65, %cst_20 [1] : vector<2x32xf32> to vector<2xf32>
    %67 = vector.shape_cast %66 : vector<2xf32> to vector<2x1xf32>
    %68 = vector.extract_strided_slice %12 {offsets = [0, 6, 0], sizes = [2, 1, 32], strides = [1, 1, 1]} : vector<2x8x32xf32> to vector<2x1x32xf32>
    %69 = vector.shape_cast %68 : vector<2x1x32xf32> to vector<2x32xf32>
    %cst_21 = arith.constant dense<0.000000e+00> : vector<2x32xf32>
    %70 = tpu.matmul %63, %0, %cst_21 {dimension_numbers = #tpu.dot_dimension_numbers<[1], [0], [0], [1], [0, 0, 1, 1], [], []>} : vector<2x32xf32>, vector<32x32xf32>, vector<2x32xf32> -> vector<2x32xf32>
    %71 = arith.addf %69, %70 : vector<2x32xf32>
    %72 = math.tanh %71 : vector<2x32xf32>
    %73 = vector.broadcast %3 : vector<1x32xf32> to vector<2x32xf32>
    %74 = arith.mulf %72, %73 : vector<2x32xf32>
    %cst_22 = arith.constant dense<0.000000e+00> : vector<2xf32>
    %75 = vector.multi_reduction <add>, %74, %cst_22 [1] : vector<2x32xf32> to vector<2xf32>
    %76 = vector.shape_cast %75 : vector<2xf32> to vector<2x1xf32>
    %77 = vector.extract_strided_slice %12 {offsets = [0, 7, 0], sizes = [2, 1, 32], strides = [1, 1, 1]} : vector<2x8x32xf32> to vector<2x1x32xf32>
    %78 = vector.shape_cast %77 : vector<2x1x32xf32> to vector<2x32xf32>
    %cst_23 = arith.constant dense<0.000000e+00> : vector<2x32xf32>
    %79 = tpu.matmul %72, %0, %cst_23 {dimension_numbers = #tpu.dot_dimension_numbers<[1], [0], [0], [1], [0, 0, 1, 1], [], []>} : vector<2x32xf32>, vector<32x32xf32>, vector<2x32xf32> -> vector<2x32xf32>
    %80 = arith.addf %78, %79 : vector<2x32xf32>
    %81 = math.tanh %80 : vector<2x32xf32>
    %82 = vector.broadcast %3 : vector<1x32xf32> to vector<2x32xf32>
    %83 = arith.mulf %81, %82 : vector<2x32xf32>
    %cst_24 = arith.constant dense<0.000000e+00> : vector<2xf32>
    %84 = vector.multi_reduction <add>, %83, %cst_24 [1] : vector<2x32xf32> to vector<2xf32>
    %85 = vector.shape_cast %84 : vector<2xf32> to vector<2x1xf32>
    %c0_25 = arith.constant 0 : index
    %c0_26 = arith.constant 0 : index
    %86 = vector.load %arg4[%c0_25, %c0_26] : memref<2x32xf32, #tpu.memory_space<vmem>>, vector<2x32xf32>
    tpu.vector_store %arg4[%c0_25, %c0_26], %81 {strides = array<i32>} : memref<2x32xf32, #tpu.memory_space<vmem>>, vector<2x32xf32>,
    %87 = tpu.concatenate %22, %31, %40, %49, %58, %67, %76, %85 in 1 : vector<2x1xf32>, vector<2x1xf32>, vector<2x1xf32>, vector<2x1xf32>, vector<2x1xf32>, vector<2x1xf32>, vector<2x1xf32>, vector<2x1xf32> -> vector<2x8xf32>
    %88 = vector.broadcast %4 : vector<1x1xf32> to vector<2x8xf32>
    %89 = arith.addf %87, %88 : vector<2x8xf32>
    %c0_27 = arith.constant 0 : index
    %c0_28 = arith.constant 0 : index
    %90 = vector.load %arg3[%c0_27, %c0_28] : memref<2x8xf32, #tpu.memory_space<vmem>>, vector<2x8xf32>
    tpu.vector_store %arg3[%c0_27, %c0_28], %89 {strides = array<i32>} : memref<2x8xf32, #tpu.memory_space<vmem>>, vector<2x8xf32>,
    return
  }
}

</mosaic_0001>

<bundles_post_ra>
// kernel: second_rnn_forward.1
= control target key start
LH: loop header
LB: loop body
LE: loop exit
PB: predicated region body
PF: predicated region fallthrough
CT: control target
= control target key end

     0   :  { %v572_v3 = vmov 0   ;;  %s695_s0 = inlined_call_operand.vmem [shape: f32[2,8,1], index: 0, kind: input, shape index: {}]   ;;  %s696_s1 = inlined_call_operand.vmem [shape: f32[2,32], index: 1, kind: input, shape index: {}, may-alias: {1,4}]   ;;  %s697_s2 = inlined_call_operand.vmem [shape: f32[40,32], index: 2, kind: input, shape index: {}]   ;;  %s698_s3 = inlined_call_operand.hbm [shape: f32[2,8], index: 3, kind: output, shape index: {0}]   ;;  %s699_s4 = inlined_call_operand.vmem [shape: f32[2,32], index: 4, kind: output, shape index: {1}, may-alias: {1,4}]  }
   0x1   :  { %v20_v0 = vld [vmem:[%s697_s2 + $0x18] sm:$0xff]  ;;  %v26_v1 = vld [vmem:[%s695_s0 + $0x8] sm:$0xff]  ;;  %v19_v2 = vld [vmem:[%s697_s2 + $0x10] sm:$0xff]  ;;  %510 = vset.pattern.permute.xlu0 %v572_v3 }
   0x2   :  { %60 = vmatpush.msra.mxu0 %v20_v0  ;;  %34 = vperm.xlu0 %510, %v26_v1   ;;  %v18_v4 = vld [vmem:[%s697_s2 + $0x8] sm:$0xff] }
   0x3   :  { %107 = vmatpush.msra.mxu1 %v20_v0  ;;  %153 = vmatpush.msra.mxu2 %v20_v0 }
   0x4   :  { %61 = vmatpush.msra.mxu0 %v19_v2 }
   0x5   :  { %10 = vsyncpa [#allocation3], 0  ;;  %v17_v5 = vld [vmem:[%s697_s2] sm:$0xff]  ;;  %108 = vmatpush.msra.mxu1 %v19_v2  ;;  %201 = vmatpush.msra.mxu3 %v20_v0  ;;  %vm44_vm0 = vcmask 261120   ;;  %vm82_vm1 = vcmask 1041409   ;;  %vm85_vm2 = vcmask 254976  }
   0x6   :  { %62 = vmatpush.msra.mxu0 %v18_v4  ;;  %v43_v6 = vld [vmem:[%s696_s1] sm:$0x3]  ;;  %154 = vmatpush.msra.mxu2 %v19_v2  ;;  %v636_v21 = vld [vmem:[%s697_s2 + $0x22] ss:$0 sm:$0xff]  ;;  %vm128_vm3 = vcmask 1042434   ;;  %vm131_vm4 = vcmask 256001  }
   0x7   :  { %109 = vmatpush.msra.mxu1 %v18_v4  ;;  %202 = vmatpush.msra.mxu3 %v19_v2  ;;  %v25_v7 = vld [vmem:[%s695_s0] sm:$0xff]  ;;  %vm175_vm5 = vcmask 1043459   ;;  %vm178_vm6 = vcmask 257026   ;;  %vm223_vm7 = vcmask 1044484   ;;  %vm226_vm8 = vcmask 258051   ;;  %s573_s12 = smov [#allocation2]  }
   0x8   :  { %63 = vmatpush.msra.mxu0 %v17_v5  ;;  %155 = vmatpush.msra.mxu2 %v18_v4  ;;  %v511_v9 = vld [vmem:[%s697_s2 + $0x20] ss:$0 sm:$0xff]  ;;  %v512_v11 = vld [vmem:[%s697_s2 + $0x21] ss:$0 sm:$0xff]  ;;  %vm271_vm9 = vcmask 1045509   ;;  %vm274_vm10 = vcmask 259076  }
   0x9   :  { %498 = vmatmul.msk.f32.vlgmr.msra.gmra.mxu0 %vm44_vm0, %v43_v6  ;;  %110 = vmatpush.msra.mxu1 %v17_v5  ;;  %vm319_vm11 = vcmask 1046534   ;;  %vm322_vm12 = vcmask 260101   ;;  %vm367_vm13 = vcmask 1047559   ;;  %vm370_vm14 = vcmask 261126   ;;  %s483_s13 = sshll.u32 %s573_s12, 4  ;;  %s485_s16 = sshll.u32 %s698_s3, 4  ;;  %s484_s13 = int_to_ptr.vmem [resolvable:$true] %s483_s13  ;;  %s486_s16 = int_to_ptr.hbm [resolvable:$true] %s485_s16 }
   0xa   :  { %156 = vmatpush.msra.mxu2 %v17_v5  ;;  %203 = vmatpush.msra.mxu3 %v18_v4  ;;  %vm417_vm15 = vcmask 261127  }
   0xb   :  { %29 = vperm.xlu0 %510, %v25_v7   ;;  %249 = vmatpush.msrb.mxu0 %v20_v0 }
   0xc   :  { %204 = vmatpush.msra.mxu3 %v17_v5  ;;  %297 = vmatpush.msrb.mxu1 %v20_v0 }
   0xd   :  { %250 = vmatpush.msrb.mxu0 %v19_v2  ;;  %345 = vmatpush.msrb.mxu2 %v20_v0 }
   0xe   :  { %298 = vmatpush.msrb.mxu1 %v19_v2  ;;  %393 = vmatpush.msrb.mxu3 %v20_v0 }
   0xf   :  { %251 = vmatpush.msrb.mxu0 %v18_v4  ;;  %346 = vmatpush.msrb.mxu2 %v19_v2 }
  0x10   :  { %299 = vmatpush.msrb.mxu1 %v18_v4  ;;  %394 = vmatpush.msrb.mxu3 %v19_v2 }
  0x11   :  { %252 = vmatpush.msrb.mxu0 %v17_v5  ;;  %347 = vmatpush.msrb.mxu2 %v18_v4 }
  0x12   :  { %300 = vmatpush.msrb.mxu1 %v17_v5  ;;  %395 = vmatpush.msrb.mxu3 %v18_v4 }
  0x13   :  { %348 = vmatpush.msrb.mxu2 %v17_v5 }
  0x14   :  { %396 = vmatpush.msrb.mxu3 %v17_v5 }
  0x74   :  { %v35_v8 = vpop.permute.xlu0 %34 }
  0x75   :  { %v39_v13 = vmul.f32 %v511_v9, %v35_v8 }
  0x77   :  { %v629_v16 = vadd.f32 %v512_v11, %v39_v13 }
  0x7d   :  { %v30_v10 = vpop.permute.xlu0 %29 }
  0x7e   :  { %v38_v12 = vmul.f32 %v511_v9, %v30_v10 }
  0x80   :  { %v627_v14 = vadd.f32 %v512_v11, %v38_v12 }
  0x86   :  { %v65_v15 = vpop.f32.mrf.mxu0 }
  0x87   :  { %v69_v17 = vrot.slane %v65_v15, 1  ;;  %v72_v18 = vadd.f32 %v65_v15, %v627_v14 }
  0x89   :  { %v73_v19 = vadd.f32 %v69_v17, %v629_v16  ;;  %514 = vtanh.f32 %v72_v18 }
  0x8b   :  { %516 = vtanh.f32 %v73_v19 }
  0x8f   :  { %v515_v20 = vpop.eup %514 }
  0x90   :  { %v77_v26 = vmul.f32 %v515_v20, %v636_v21 }
  0x91   :  { %v517_v22 = vpop.eup %516 }
  0x92   :  { %v91_v23 = vrot.slane %v517_v22, 7  ;;  %v78_v24 = vmul.f32 %v517_v22, %v636_v21 }
  0x94   :  { %v92_v25 = vsel %vm82_vm1, %v91_v23, %v515_v20  ;;  %v81_v27 = vrot.slane %v78_v24, 7 }
  0x95   :  { %499 = vmatmul.msk.f32.vlgmr.msra.gmra.mxu1 %vm44_vm0, %v92_v25 }
  0x96   :  { %v83_v28 = vsel %vm82_vm1, %v81_v27, %v77_v26 }
  0x97   :  { %v86_v29 = vsel %vm85_vm2, %v83_v28, 0.0  ;;  %vm459_vm2 = vcmask 15360  }
  0x98   :  { %87 = vadd.xlane.f32.xlu2 %v86_v29 }
 0x112   :  { %v112_v30 = vpop.f32.mrf.mxu1 }
 0x113   :  { %v116_v31 = vrot.slane %v112_v30, 7  ;;  %v120_v32 = vadd.f32 %v112_v30, %v629_v16 }
 0x115   :  { %v119_v33 = vadd.f32 %v116_v31, %v627_v14  ;;  %518 = vtanh.f32 %v120_v32 }
 0x117   :  { %520 = vtanh.f32 %v119_v33 }
 0x11b   :  { %v519_v34 = vpop.eup %518 }
 0x11c   :  { %v124_v35 = vmul.f32 %v519_v34, %v636_v21 }
 0x11d   :  { %v521_v36 = vpop.eup %520 }
 0x11e   :  { %v137_v37 = vrot.slane %v521_v36, 1  ;;  %v123_v38 = vmul.f32 %v521_v36, %v636_v21  ;;  %v127_v39 = vrot.slane %v124_v35, 7 }
 0x120   :  { %v138_v40 = vsel %vm82_vm1, %v519_v34, %v137_v37  ;;  %v129_v41 = vsel %vm128_vm3, %v127_v39, %v123_v38  ;;  %vm461_vm3 = vcmask 23552  }
 0x121   :  { %500 = vmatmul.msk.f32.vlgmr.msra.gmra.mxu2 %vm44_vm0, %v138_v40  ;;  %v132_v42 = vsel %vm131_vm4, %v129_v41, 0.0  ;;  %vm463_vm4 = vcmask 31744  }
 0x122   :  { %133 = vadd.xlane.f32.xlu1 %v132_v42 }
 0x1a4   :  { %v158_v43 = vpop.f32.mrf.mxu2 }
 0x1a5   :  { %v162_v44 = vrot.slane %v158_v43, 6  ;;  %v163_v45 = vrot.slane %v158_v43, 7 }
 0x1a7   :  { %v166_v46 = vadd.f32 %v162_v44, %v627_v14  ;;  %v167_v47 = vadd.f32 %v163_v45, %v629_v16 }
 0x1a9   :  { %522 = vtanh.f32 %v166_v46 }
 0x1aa   :  { %524 = vtanh.f32 %v167_v47 }
 0x1af   :  { %v523_v48 = vpop.eup %522 }
 0x1b0   :  { %v525_v49 = vpop.eup %524  ;;  %v184_v50 = vrot.slane %v523_v48, 2  ;;  %v170_v54 = vmul.f32 %v523_v48, %v636_v21 }
 0x1b1   :  { %v185_v51 = vrot.slane %v525_v49, 1  ;;  %v171_v52 = vmul.f32 %v525_v49, %v636_v21 }
 0x1b3   :  { %v186_v53 = vsel %vm82_vm1, %v185_v51, %v184_v50  ;;  %v174_v55 = vrot.slane %v171_v52, 7 }
 0x1b4   :  { %501 = vmatmul.msk.f32.vlgmr.msra.gmra.mxu3 %vm44_vm0, %v186_v53 }
 0x1b5   :  { %v176_v56 = vsel %vm175_vm5, %v174_v55, %v170_v54  ;;  %vm465_vm5 = vcmask 39936  }
 0x1b6   :  { %v179_v57 = vsel %vm178_vm6, %v176_v56, 0.0  ;;  %vm452_vm6 = vcmask 1040384  }
 0x1b7   :  { %180 = vadd.xlane.f32.xlu1 %v179_v57  ;;  %v24_v57 = vld [vmem:[%s697_s2 + $0x23] sm:$0x1] }
 0x1b8   :  { %506 = vpush %v24_v57 }
 0x237   :  { %v206_v58 = vpop.f32.mrf.mxu3 }
 0x238   :  { %v210_v59 = vrot.slane %v206_v58, 5  ;;  %v211_v60 = vrot.slane %v206_v58, 6 }
 0x23a   :  { %v214_v61 = vadd.f32 %v210_v59, %v627_v14  ;;  %v215_v62 = vadd.f32 %v211_v60, %v629_v16 }
 0x23c   :  { %526 = vtanh.f32 %v214_v61 }
 0x23d   :  { %528 = vtanh.f32 %v215_v62 }
 0x242   :  { %v527_v63 = vpop.eup %526 }
 0x243   :  { %v529_v0 = vpop.eup %528  ;;  %v232_v1 = vrot.slane %v527_v63, 3  ;;  %v218_v5 = vmul.f32 %v527_v63, %v636_v21 }
 0x244   :  { %v233_v2 = vrot.slane %v529_v0, 2  ;;  %v219_v3 = vmul.f32 %v529_v0, %v636_v21 }
 0x246   :  { %v234_v4 = vsel %vm82_vm1, %v233_v2, %v232_v1  ;;  %v222_v6 = vrot.slane %v219_v3, 7 }
 0x247   :  { %502 = vmatmul.msk.f32.vlgmr.msrb.gmra.mxu0 %vm44_vm0, %v234_v4 }
 0x248   :  { %v224_v7 = vsel %vm223_vm7, %v222_v6, %v218_v5  ;;  %v134_v5 = vpop.xlane.xlu1 %133  ;;  %v88_v6 = vpop.xlane.xlu2 %87  ;;  %vm467_vm7 = vcmask 48128  }
 0x249   :  { %v227_v8 = vsel %vm226_vm8, %v224_v7, 0.0  ;;  %vm469_vm8 = vcmask 56320  }
 0x24a   :  { %228 = vadd.xlane.f32.xlu2 %v227_v8 }
 0x250   :  { %v181_v7 = vpop.xlane.xlu1 %180 }
 0x2bd   :  { %v229_v8 = vpop.xlane.xlu2 %228 }
 0x2c4   :  { %v254_v9 = vpop.f32.mrf.mxu0 }
 0x2c5   :  { %v258_v10 = vrot.slane %v254_v9, 4  ;;  %v259_v11 = vrot.slane %v254_v9, 5 }
 0x2c7   :  { %v262_v12 = vadd.f32 %v258_v10, %v627_v14  ;;  %v263_v13 = vadd.f32 %v259_v11, %v629_v16  ;;  %v433_v11 = vrot.slane %v134_v5, 1 }
 0x2c9   :  { %530 = vtanh.f32 %v262_v12 }
 0x2ca   :  { %532 = vtanh.f32 %v263_v13  ;;  %v439_v13 = vrot.slane %v229_v8, 3 }
 0x2cf   :  { %v531_v15 = vpop.eup %530 }
 0x2d0   :  { %v533_v17 = vpop.eup %532  ;;  %v280_v18 = vrot.slane %v531_v15, 4  ;;  %v266_v23 = vmul.f32 %v531_v15, %v636_v21 }
 0x2d1   :  { %v281_v19 = vrot.slane %v533_v17, 3  ;;  %v267_v20 = vmul.f32 %v533_v17, %v636_v21 }
 0x2d3   :  { %v282_v22 = vsel %vm82_vm1, %v281_v19, %v280_v18  ;;  %v270_v24 = vrot.slane %v267_v20, 7 }
 0x2d4   :  { %503 = vmatmul.msk.f32.vlgmr.msrb.gmra.mxu1 %vm44_vm0, %v282_v22 }
 0x2d5   :  { %v272_v25 = vsel %vm271_vm9, %v270_v24, %v266_v23  ;;  %vm476_vm9 = vcmask 58368  }
 0x2d6   :  { %v275_v26 = vsel %vm274_vm10, %v272_v25, 0.0 }
 0x2d7   :  { %276 = vadd.xlane.f32.xlu0 %v275_v26 }
 0x34a   :  { %v277_v12 = vpop.xlane.xlu0 %276 }
 0x34b   :  { %v442_v15 = vrot.slane %v277_v12, 4 }
 0x351   :  { %v302_v27 = vpop.f32.mrf.mxu1 }
 0x352   :  { %v306_v28 = vrot.slane %v302_v27, 3  ;;  %v307_v29 = vrot.slane %v302_v27, 4 }
 0x354   :  { %v310_v30 = vadd.f32 %v306_v28, %v627_v14  ;;  %v311_v31 = vadd.f32 %v307_v29, %v629_v16 }
 0x356   :  { %534 = vtanh.f32 %v310_v30 }
 0x357   :  { %536 = vtanh.f32 %v311_v31 }
 0x35c   :  { %v535_v32 = vpop.eup %534 }
 0x35d   :  { %v537_v33 = vpop.eup %536  ;;  %v328_v34 = vrot.slane %v535_v32, 5  ;;  %v314_v38 = vmul.f32 %v535_v32, %v636_v21 }
 0x35e   :  { %v329_v35 = vrot.slane %v537_v33, 4  ;;  %v315_v36 = vmul.f32 %v537_v33, %v636_v21 }
 0x360   :  { %v330_v37 = vsel %vm82_vm1, %v329_v35, %v328_v34  ;;  %v318_v39 = vrot.slane %v315_v36, 7 }
 0x361   :  { %504 = vmatmul.msk.f32.vlgmr.msrb.gmra.mxu2 %vm44_vm0, %v330_v37 }
 0x362   :  { %v320_v40 = vsel %vm319_vm11, %v318_v39, %v314_v38 }
 0x363   :  { %v323_v41 = vsel %vm322_vm12, %v320_v40, 0.0 }
 0x364   :  { %324 = vadd.xlane.f32.xlu1 %v323_v41 }
 0x3d7   :  { %v325_v9 = vpop.xlane.xlu1 %324 }
 0x3d8   :  { %v445_v18 = vrot.slane %v325_v9, 5 }
 0x3e4   :  { %v350_v42 = vpop.f32.mrf.mxu2 }
 0x3e5   :  { %v354_v43 = vrot.slane %v350_v42, 2  ;;  %v355_v44 = vrot.slane %v350_v42, 3 }
 0x3e7   :  { %v358_v45 = vadd.f32 %v354_v43, %v627_v14  ;;  %v359_v46 = vadd.f32 %v355_v44, %v629_v16 }
 0x3e9   :  { %538 = vtanh.f32 %v358_v45 }
 0x3ea   :  { %540 = vtanh.f32 %v359_v46 }
 0x3ef   :  { %v539_v47 = vpop.eup %538 }
 0x3f0   :  { %v541_v48 = vpop.eup %540  ;;  %v376_v49 = vrot.slane %v539_v47, 6  ;;  %v362_v53 = vmul.f32 %v539_v47, %v636_v21 }
 0x3f1   :  { %v377_v50 = vrot.slane %v541_v48, 5  ;;  %v363_v51 = vmul.f32 %v541_v48, %v636_v21 }
 0x3f3   :  { %v378_v52 = vsel %vm82_vm1, %v377_v50, %v376_v49  ;;  %v366_v54 = vrot.slane %v363_v51, 7  ;;  %vm457_vm1 = vcmask 7168  }
 0x3f4   :  { %505 = vmatmul.msk.f32.vlgmr.msrb.gmra.mxu3 %vm44_vm0, %v378_v52  ;;  %vm421_vm0 = vcmask 253952   ;;  %v458_v17 = vsel %vm457_vm1, %v88_v6, %v433_v11 }
 0x3f5   :  { %v368_v55 = vsel %vm367_vm13, %v366_v54, %v362_v53 }
 0x3f6   :  { %v371_v56 = vsel %vm370_vm14, %v368_v55, 0.0 }
 0x3f7   :  { %372 = vadd.xlane.f32.xlu2 %v371_v56 }
 0x46a   :  { %v373_v10 = vpop.xlane.xlu2 %372 }
 0x46b   :  { %v448_v22 = vrot.slane %v373_v10, 6 }
 0x477   :  { %v398_v58 = vpop.f32.mrf.mxu3 }
 0x478   :  { %v402_v59 = vrot.slane %v398_v58, 1  ;;  %v403_v60 = vrot.slane %v398_v58, 2 }
 0x47a   :  { %v406_v61 = vadd.f32 %v402_v59, %v627_v14  ;;  %v407_v62 = vadd.f32 %v403_v60, %v629_v16 }
 0x47c   :  { %542 = vtanh.f32 %v406_v61 }
 0x47d   :  { %544 = vtanh.f32 %v407_v62 }
 0x482   :  { %v543_v63 = vpop.eup %542 }
 0x483   :  { %v545_v0 = vpop.eup %544  ;;  %v410_v1 = vmul.f32 %v543_v63, %v636_v21  ;;  %430 = vst.msk [vmem:[%s699_s4 - $0x7] sm:$0x80] %vm417_vm15, %v543_v63 }
 0x484   :  { %v411_v2 = vmul.f32 %v545_v0, %v636_v21  ;;  %v427_v3 = vrot.slane %v545_v0, 7  ;;  %v436_v21 = vrot.slane %v181_v7, 2 }
 0x485   :  { %v418_v4 = vsel %vm417_vm15, %v410_v1, 0.0 }
 0x486   :  { %419 = vadd.xlane.f32.xlu1 %v418_v4  ;;  %v414_v14 = vrot.slane %v411_v2, 7  ;;  %431 = vst.msk [vmem:[%s699_s4 + $0x1] sm:$0x1] %vm421_vm0, %v427_v3  ;;  %v460_v20 = vsel %vm459_vm2, %v458_v17, %v436_v21  ;;  %s507_s4 = spop %506 }
 0x487   :  { %v462_v23 = vsel %vm461_vm3, %v460_v20, %v439_v13  ;;  %v473_v29 = vstv %s507_s4 }
 0x488   :  { %v422_v16 = vsel %vm421_vm0, %v414_v14, 0.0  ;;  %v464_v25 = vsel %vm463_vm4, %v462_v23, %v442_v15 }
 0x489   :  { %423 = vadd.xlane.f32.xlu2 %v422_v16  ;;  %v466_v28 = vsel %vm465_vm5, %v464_v25, %v445_v18 }
 0x48a   :  { %v468_v31 = vsel %vm467_vm7, %v466_v28, %v448_v22 }
 0x4f9   :  { %v420_v19 = vpop.xlane.xlu1 %419 }
 0x4fa   :  { %v453_v26 = vrot.slane %v420_v19, 7 }
 0x4fc   :  { %v424_v24 = vpop.xlane.xlu2 %423 }
 0x4fd   :  { %v454_v27 = vrot.slane %v424_v24, 7 }
 0x4ff   :  { %v455_v30 = vsel %vm452_vm6, %v453_v26, %v454_v27 }
 0x500   :  { %v470_v32 = vsel %vm469_vm8, %v468_v31, %v455_v30 }
 0x501   :  { %v475_v33 = vadd.f32 %v473_v29, %v470_v32 }
 0x503   :  { %477 = vst.msk [vmem:[#allocation2] sm:$0x3] %vm476_vm9, %v475_v33 }
 0x504   :  { %488 = dma.vmem_to_hbm [thread:$0]  %s484_s13, 32, %s486_s16, [#allocation3]  }
 0x505   :  { %570 = dma.done.wait [#allocation3], 32  }
 0x506   :  { %571 = vsyncadd [#allocation3], 4294967264 }
 0x507   :  { %497 = vsyncpa [#allocation3], 1 }

</bundles_post_ra>
